<compile_context>
chip_gen: v5e
topology: v5e:2x2
jax: 0.10.0
libtpu: 0.0.40
codegen_flags: <defaults>
</compile_context>

<pallas_src>
import functools

import jax
import jax.numpy as jnp
from jax.experimental import pallas as pl
from jax.experimental.pallas import tpu as pltpu

_LANE = 128                      # lane width (last dim of every block)
_SUB = 8                         # f32 sublanes per vreg
_FOLD_ROWS = 64                  # stage-1 fold granularity; tiles are multiples of this
_TILE_ROWS_MAX = 8192            # 8192 * 128 * 4 B = 4 MiB f32 per operand per grid step
_VMEM_LIMIT = 48 * 1024 * 1024   # 16 MiB double-buffers + temporaries, < 64 MiB v7x physical
_NUM_CORE_SPLITS = 2             # leading "parallel" grid axis -> both TensorCores on v7x


def _dice_partial_kernel(x_ref, t_ref, out_ref, *, tile_rows, valid_rows,
                         blocks_per_core):
    """Streams one (tile_rows, 128) block per grid step.

    Grid is (n_core_splits, blocks_per_core); axis 0 is "parallel" so each
    TensorCore (v7x) streams its own share of the rows into its own
    (1, 3, 8, 128) partial-sum slab; axis 1 is the sequential reduction axis.

    out_ref holds lane-parallel partial sums of
      [sigmoid(x) * t, sigmoid(x), t];
    the scalar dice formula is applied in the JAX wrapper.
    """
    c = pl.program_id(0)
    i = pl.program_id(1)
    b = c * blocks_per_core + i          # global block index (may overhang range)

    @pl.when(i == 0)
    def _init():
        out_ref[...] = jnp.zeros_like(out_ref)

    x = x_ref[...].astype(jnp.float32)
    t = t_ref[...].astype(jnp.float32)
    # sigmoid(x) == 0.5 * tanh(0.5 * x) + 0.5  -> a single EUP push per vreg.
    s = 0.5 * jnp.tanh(0.5 * x) + 0.5

    def _fold(v):
        # Two-stage lane-parallel fold: (tile_rows,128) -> (64,128) -> (8,128).
        # Pure VPU adds with ~8 independent chains, so VALU latency never
        # becomes the in-step critical path at 8192-row tiles.
        p = v.reshape(-1, _FOLD_ROWS, _LANE).sum(axis=0)
        return p.reshape(_FOLD_ROWS // _SUB, _SUB, _LANE).sum(axis=0)

    def _accumulate(sv, tv):
        out_ref[0, 0] += _fold(sv * tv)  # intersection partials
        out_ref[0, 1] += _fold(sv)       # sum(sigmoid(x)) partials
        out_ref[0, 2] += _fold(tv)       # sum(targets) partials

    # Rows of this block that lie inside the real array; the rest is OOB
    # garbage from the partial last block (or the clamped duplicate block when
    # the block count is odd) and must contribute nothing.
    valid = valid_rows - b * tile_rows

    @pl.when(valid >= tile_rows)
    def _full_block():
        _accumulate(s, t)

    @pl.when(jnp.logical_and(valid > 0, valid < tile_rows))
    def _partial_block():
        # Row-granular mask (the <128-element lane tail is handled in the
        # wrapper).  jnp.where (select) keeps any NaN garbage out of the sums.
        row = jax.lax.broadcasted_iota(jnp.int32, s.shape, 0)
        keep = row < valid
        zero = jnp.float32(0.0)
        _accumulate(jnp.where(keep, s, zero), jnp.where(keep, t, zero))


def dice_loss(inputs, targets, smooth=1.0):
    """Pallas implementation of DiceLoss.forward.  Returns a scalar f32."""
    x = inputs.reshape(-1)
    t = targets.reshape(-1)
    n = int(x.shape[0])
    n_main = (n // _LANE) * _LANE        # lane-aligned prefix handled by the kernel

    smooth = jnp.float32(smooth)
    zero = jnp.float32(0.0)
    tail_inter = tail_s = tail_t = zero

    if n_main < n:
        # < 128 trailing elements: tiny pure-JAX tail.  Avoids a full-array
        # pad/copy of the big tensor just to reach a 128 multiple.
        xt = x[n_main:].astype(jnp.float32)
        tt = t[n_main:].astype(jnp.float32)
        st = jax.nn.sigmoid(xt)
        tail_inter = jnp.sum(st * tt)
        tail_s = jnp.sum(st)
        tail_t = jnp.sum(tt)

    if n_main == 0:
        inter, sum_s, sum_t = tail_inter, tail_s, tail_t
    else:
        rows = n_main // _LANE
        x2 = (x if n_main == n else x[:n_main]).reshape(rows, _LANE)
        t2 = (t if n_main == n else t[:n_main]).reshape(rows, _LANE)

        if rows < _FOLD_ROWS:
            # Tiny inputs only (< 8K elements): pad to one minimal row tile.
            # Padded rows are excluded by the kernel's row mask.
            x2 = jnp.pad(x2, ((0, _FOLD_ROWS - rows), (0, 0)))
            t2 = jnp.pad(t2, ((0, _FOLD_ROWS - rows), (0, 0)))
        rows_arr = int(x2.shape[0])

        tile_rows = min(_TILE_ROWS_MAX, (rows_arr // _FOLD_ROWS) * _FOLD_ROWS)
        total_blocks = pl.cdiv(rows_arr, tile_rows)
        n_splits = _NUM_CORE_SPLITS if total_blocks >= _NUM_CORE_SPLITS else 1
        blocks_per_core = pl.cdiv(total_blocks, n_splits)

        def in_map(c, i):
            b = c * blocks_per_core + i
            # Clamp the (at most one) overhanging step of the last core split
            # back in range; the kernel skips its contribution entirely.
            return (jnp.minimum(b, total_blocks - 1), 0)

        kernel = functools.partial(
            _dice_partial_kernel,
            tile_rows=tile_rows,
            valid_rows=rows,
            blocks_per_core=blocks_per_core,
        )

        itemsize = max(x2.dtype.itemsize, t2.dtype.itemsize)
        cost = pl.CostEstimate(
            flops=8 * n_main,
            transcendentals=n_main,
            bytes_accessed=2 * n_main * itemsize,
        )

        parts = pl.pallas_call(
            kernel,
            out_shape=jax.ShapeDtypeStruct((n_splits, 3, _SUB, _LANE),
                                           jnp.float32),
            grid_spec=pltpu.PrefetchScalarGridSpec(
                num_scalar_prefetch=0,
                grid=(n_splits, blocks_per_core),
                in_specs=[
                    pl.BlockSpec((tile_rows, _LANE), in_map),
                    pl.BlockSpec((tile_rows, _LANE), in_map),
                ],
                out_specs=pl.BlockSpec((1, 3, _SUB, _LANE),
                                       lambda c, i: (c, 0, 0, 0)),
            ),
            compiler_params=pltpu.CompilerParams(
                # Axis 0 shards the stream across TensorCores (2x on v7x);
                # axis 1 is the sequential global-reduction axis.
                dimension_semantics=("parallel", "arbitrary"),
                vmem_limit_bytes=_VMEM_LIMIT,
            ),
            cost_estimate=cost,
        )(x2, t2)

        sums = jnp.sum(parts, axis=(0, 2, 3))    # (3,) partial sums
        inter = sums[0] + tail_inter
        sum_s = sums[1] + tail_s
        sum_t = sums[2] + tail_t

    dice = (2.0 * inter + smooth) / (sum_s + sum_t + smooth)
    return jnp.float32(1.0) - dice


def _dice_loss_ref(inputs, targets, smooth=1.0):
    """Pure-JAX reference mirroring the PyTorch module."""
    s = jax.nn.sigmoid(inputs.astype(jnp.float32))
    t = targets.astype(jnp.float32)
    inter = jnp.sum(s * t)
    dice = (2.0 * inter + smooth) / (jnp.sum(s) + jnp.sum(t) + smooth)
    return 1.0 - dice


if __name__ == "__main__":
    key = jax.random.PRNGKey(0)
    k1, k2 = jax.random.split(key)

    # Small NCHW logits/mask pair (single padded row tile, masked pad rows).
    B, C, H, W = 2, 4, 16, 16
    inputs = jax.random.normal(k1, (B, C, H, W), dtype=jnp.float32)
    targets = jax.random.bernoulli(k2, 0.5, (B, C, H, W)).astype(jnp.float32)
    loss = jax.block_until_ready(dice_loss(inputs, targets, smooth=1.0))
    ref = jax.block_until_ready(_dice_loss_ref(inputs, targets, smooth=1.0))
    assert jnp.allclose(loss, ref, rtol=1e-4, atol=1e-5), (loss, ref)

    # Ragged shape exercising the wrapper-side <128-element lane tail.
    k3, k4 = jax.random.split(k1)
    inputs2 = jax.random.normal(k3, (1, 3, 15, 17), dtype=jnp.float32)
    targets2 = jax.random.bernoulli(k4, 0.5, (1, 3, 15, 17)).astype(jnp.float32)
    loss2 = jax.block_until_ready(dice_loss(inputs2, targets2, smooth=1.0))
    ref2 = jax.block_until_ready(_dice_loss_ref(inputs2, targets2, smooth=1.0))
    assert jnp.allclose(loss2, ref2, rtol=1e-4, atol=1e-5), (loss2, ref2)

    # Shape exercising the 2-way core split, a full block and a masked
    # partial last block (240 rows -> two 192-row grid steps).
    k5, k6 = jax.random.split(k2)
    inputs3 = jax.random.normal(k5, (2, 3, 40, 128), dtype=jnp.float32)
    targets3 = jax.random.bernoulli(k6, 0.5, (2, 3, 40, 128)).astype(jnp.float32)
    loss3 = jax.block_until_ready(dice_loss(inputs3, targets3, smooth=1.0))
    ref3 = jax.block_until_ready(_dice_loss_ref(inputs3, targets3, smooth=1.0))
    assert jnp.allclose(loss3, ref3, rtol=1e-4, atol=1e-5), (loss3, ref3)

    print("KERNEL_OK")
</pallas_src>

<mosaic_0001>
module attributes {stable_mosaic.version = 11 : i64} {
  func.func @_dice_partial_kernel(%arg0: i32, %arg1: i32, %arg2: memref<64x128xf32, #tpu.memory_space<vmem>>, %arg3: memref<64x128xf32, #tpu.memory_space<vmem>>, %arg4: memref<1x3x8x128xf32, #tpu.memory_space<vmem>>) attributes {dimension_semantics = [#tpu.dimension_semantics<parallel>, #tpu.dimension_semantics<arbitrary>], iteration_bounds = array<i64: 1, 1>, scalar_prefetch = 0 : i64, scratch_operands = 0 : i64, tpu.core_type = #tpu.core_type<tc>, window_params = [{transform_indices = @transform_0, window_bounds = array<i64: 64, 128>}, {transform_indices = @transform_1, window_bounds = array<i64: 64, 128>}, {transform_indices = @transform_2, window_bounds = array<i64: 1, 3, 8, 128>}]} {
    %c1_i32 = arith.constant 1 : i32
    %0 = arith.muli %arg0, %c1_i32 : i32
    %1 = arith.addi %0, %arg1 : i32
    %c0_i32 = arith.constant 0 : i32
    %2 = arith.cmpi eq, %arg1, %c0_i32 : i32
    %3 = arith.extui %2 : i1 to i32
    %c0_i32_0 = arith.constant 0 : i32
    %4 = arith.cmpi ne, %3, %c0_i32_0 : i32
    scf.if %4 {
      %cst_11 = arith.constant 0.000000e+00 : f32
      %24 = vector.broadcast %cst_11 : f32 to vector<1x3x8x128xf32>
      %c0_12 = arith.constant 0 : index
      %c0_13 = arith.constant 0 : index
      %c0_14 = arith.constant 0 : index
      %c0_15 = arith.constant 0 : index
      %25 = vector.load %arg4[%c0_12, %c0_13, %c0_14, %c0_15] : memref<1x3x8x128xf32, #tpu.memory_space<vmem>>, vector<1x3x8x128xf32>
      tpu.vector_store %arg4[%c0_12, %c0_13, %c0_14, %c0_15], %24 {strides = array<i32>} : memref<1x3x8x128xf32, #tpu.memory_space<vmem>>, vector<1x3x8x128xf32>,
    } else {
    }
    %c0 = arith.constant 0 : index
    %c0_1 = arith.constant 0 : index
    %5 = vector.load %arg2[%c0, %c0_1] : memref<64x128xf32, #tpu.memory_space<vmem>>, vector<64x128xf32>
    %c0_2 = arith.constant 0 : index
    %c0_3 = arith.constant 0 : index
    %6 = vector.load %arg3[%c0_2, %c0_3] : memref<64x128xf32, #tpu.memory_space<vmem>>, vector<64x128xf32>
    %cst = arith.constant 5.000000e-01 : f32
    %7 = vector.broadcast %cst : f32 to vector<64x128xf32>
    %8 = arith.mulf %7, %5 : vector<64x128xf32>
    %9 = math.tanh %8 : vector<64x128xf32>
    %cst_4 = arith.constant 5.000000e-01 : f32
    %10 = vector.broadcast %cst_4 : f32 to vector<64x128xf32>
    %11 = arith.mulf %10, %9 : vector<64x128xf32>
    %cst_5 = arith.constant 5.000000e-01 : f32
    %12 = vector.broadcast %cst_5 : f32 to vector<64x128xf32>
    %13 = arith.addf %11, %12 : vector<64x128xf32>
    %c64_i32 = arith.constant 64 : i32
    %14 = arith.muli %1, %c64_i32 : i32
    %c16_i32 = arith.constant 16 : i32
    %15 = arith.subi %c16_i32, %14 : i32
    %c64_i32_6 = arith.constant 64 : i32
    %16 = arith.cmpi sge, %15, %c64_i32_6 : i32
    %17 = arith.extui %16 : i1 to i32
    %c0_i32_7 = arith.constant 0 : i32
    %18 = arith.cmpi ne, %17, %c0_i32_7 : i32
    scf.if %18 {
      %c0_11 = arith.constant 0 : index
      %c0_12 = arith.constant 0 : index
      %c0_13 = arith.constant 0 : index
      %c0_14 = arith.constant 0 : index
      %24 = vector.load %arg4[%c0_11, %c0_12, %c0_13, %c0_14] : memref<1x3x8x128xf32, #tpu.memory_space<vmem>>, vector<1x1x8x128xf32>
      %25 = vector.shape_cast %24 : vector<1x1x8x128xf32> to vector<8x128xf32>
      %26 = arith.mulf %13, %6 : vector<64x128xf32>
      %27 = vector.shape_cast %26 : vector<64x128xf32> to vector<1x64x128xf32>
      %cst_15 = arith.constant dense<0.000000e+00> : vector<64x128xf32>
      %28 = vector.multi_reduction <add>, %27, %cst_15 [0] : vector<1x64x128xf32> to vector<64x128xf32>
      %29 = vector.shape_cast %28 : vector<64x128xf32> to vector<8x8x128xf32>
      %cst_16 = arith.constant dense<0.000000e+00> : vector<8x128xf32>
      %30 = vector.multi_reduction <add>, %29, %cst_16 [0] : vector<8x8x128xf32> to vector<8x128xf32>
      %31 = arith.addf %25, %30 : vector<8x128xf32>
      %c0_17 = arith.constant 0 : index
      %c0_18 = arith.constant 0 : index
      %c0_19 = arith.constant 0 : index
      %c0_20 = arith.constant 0 : index
      %32 = vector.load %arg4[%c0_17, %c0_18, %c0_19, %c0_20] : memref<1x3x8x128xf32, #tpu.memory_space<vmem>>, vector<1x1x8x128xf32>
      %33 = vector.shape_cast %32 : vector<1x1x8x128xf32> to vector<8x128xf32>
      %34 = vector.shape_cast %31 : vector<8x128xf32> to vector<1x1x8x128xf32>
      tpu.vector_store %arg4[%c0_17, %c0_18, %c0_19, %c0_20], %34 {strides = array<i32>} : memref<1x3x8x128xf32, #tpu.memory_space<vmem>>, vector<1x1x8x128xf32>,
      %c0_21 = arith.constant 0 : index
      %c1 = arith.constant 1 : index
      %c0_22 = arith.constant 0 : index
      %c0_23 = arith.constant 0 : index
      %35 = vector.load %arg4[%c0_21, %c1, %c0_22, %c0_23] : memref<1x3x8x128xf32, #tpu.memory_space<vmem>>, vector<1x1x8x128xf32>
      %36 = vector.shape_cast %35 : vector<1x1x8x128xf32> to vector<8x128xf32>
      %37 = vector.shape_cast %13 : vector<64x128xf32> to vector<1x64x128xf32>
      %cst_24 = arith.constant dense<0.000000e+00> : vector<64x128xf32>
      %38 = vector.multi_reduction <add>, %37, %cst_24 [0] : vector<1x64x128xf32> to vector<64x128xf32>
      %39 = vector.shape_cast %38 : vector<64x128xf32> to vector<8x8x128xf32>
      %cst_25 = arith.constant dense<0.000000e+00> : vector<8x128xf32>
      %40 = vector.multi_reduction <add>, %39, %cst_25 [0] : vector<8x8x128xf32> to vector<8x128xf32>
      %41 = arith.addf %36, %40 : vector<8x128xf32>
      %c0_26 = arith.constant 0 : index
      %c1_27 = arith.constant 1 : index
      %c0_28 = arith.constant 0 : index
      %c0_29 = arith.constant 0 : index
      %42 = vector.load %arg4[%c0_26, %c1_27, %c0_28, %c0_29] : memref<1x3x8x128xf32, #tpu.memory_space<vmem>>, vector<1x1x8x128xf32>
      %43 = vector.shape_cast %42 : vector<1x1x8x128xf32> to vector<8x128xf32>
      %44 = vector.shape_cast %41 : vector<8x128xf32> to vector<1x1x8x128xf32>
      tpu.vector_store %arg4[%c0_26, %c1_27, %c0_28, %c0_29], %44 {strides = array<i32>} : memref<1x3x8x128xf32, #tpu.memory_space<vmem>>, vector<1x1x8x128xf32>,
      %c0_30 = arith.constant 0 : index
      %c2 = arith.constant 2 : index
      %c0_31 = arith.constant 0 : index
      %c0_32 = arith.constant 0 : index
      %45 = vector.load %arg4[%c0_30, %c2, %c0_31, %c0_32] : memref<1x3x8x128xf32, #tpu.memory_space<vmem>>, vector<1x1x8x128xf32>
      %46 = vector.shape_cast %45 : vector<1x1x8x128xf32> to vector<8x128xf32>
      %47 = vector.shape_cast %6 : vector<64x128xf32> to vector<1x64x128xf32>
      %cst_33 = arith.constant dense<0.000000e+00> : vector<64x128xf32>
      %48 = vector.multi_reduction <add>, %47, %cst_33 [0] : vector<1x64x128xf32> to vector<64x128xf32>
      %49 = vector.shape_cast %48 : vector<64x128xf32> to vector<8x8x128xf32>
      %cst_34 = arith.constant dense<0.000000e+00> : vector<8x128xf32>
      %50 = vector.multi_reduction <add>, %49, %cst_34 [0] : vector<8x8x128xf32> to vector<8x128xf32>
      %51 = arith.addf %46, %50 : vector<8x128xf32>
      %c0_35 = arith.constant 0 : index
      %c2_36 = arith.constant 2 : index
      %c0_37 = arith.constant 0 : index
      %c0_38 = arith.constant 0 : index
      %52 = vector.load %arg4[%c0_35, %c2_36, %c0_37, %c0_38] : memref<1x3x8x128xf32, #tpu.memory_space<vmem>>, vector<1x1x8x128xf32>
      %53 = vector.shape_cast %52 : vector<1x1x8x128xf32> to vector<8x128xf32>
      %54 = vector.shape_cast %51 : vector<8x128xf32> to vector<1x1x8x128xf32>
      tpu.vector_store %arg4[%c0_35, %c2_36, %c0_37, %c0_38], %54 {strides = array<i32>} : memref<1x3x8x128xf32, #tpu.memory_space<vmem>>, vector<1x1x8x128xf32>,
    } else {
    }
    %c0_i32_8 = arith.constant 0 : i32
    %19 = arith.cmpi sgt, %15, %c0_i32_8 : i32
    %c64_i32_9 = arith.constant 64 : i32
    %20 = arith.cmpi slt, %15, %c64_i32_9 : i32
    %21 = arith.andi %19, %20 : i1
    %22 = arith.extui %21 : i1 to i32
    %c0_i32_10 = arith.constant 0 : i32
    %23 = arith.cmpi ne, %22, %c0_i32_10 : i32
    scf.if %23 {
      %24 = tpu.iota {dimensions = array<i32: 0>} : vector<64x128xi32>
      %25 = vector.broadcast %15 : i32 to vector<64x128xi32>
      %26 = arith.cmpi slt, %24, %25 : vector<64x128xi32>
      %cst_11 = arith.constant 0.000000e+00 : f32
      %27 = vector.broadcast %cst_11 : f32 to vector<64x128xf32>
      %28 = arith.select %26, %13, %27 : vector<64x128xi1>, vector<64x128xf32>
      %cst_12 = arith.constant 0.000000e+00 : f32
      %29 = vector.broadcast %cst_12 : f32 to vector<64x128xf32>
      %30 = arith.select %26, %6, %29 : vector<64x128xi1>, vector<64x128xf32>
      %c0_13 = arith.constant 0 : index
      %c0_14 = arith.constant 0 : index
      %c0_15 = arith.constant 0 : index
      %c0_16 = arith.constant 0 : index
      %31 = vector.load %arg4[%c0_13, %c0_14, %c0_15, %c0_16] : memref<1x3x8x128xf32, #tpu.memory_space<vmem>>, vector<1x1x8x128xf32>
      %32 = vector.shape_cast %31 : vector<1x1x8x128xf32> to vector<8x128xf32>
      %33 = arith.mulf %28, %30 : vector<64x128xf32>
      %34 = vector.shape_cast %33 : vector<64x128xf32> to vector<1x64x128xf32>
      %cst_17 = arith.constant dense<0.000000e+00> : vector<64x128xf32>
      %35 = vector.multi_reduction <add>, %34, %cst_17 [0] : vector<1x64x128xf32> to vector<64x128xf32>
      %36 = vector.shape_cast %35 : vector<64x128xf32> to vector<8x8x128xf32>
      %cst_18 = arith.constant dense<0.000000e+00> : vector<8x128xf32>
      %37 = vector.multi_reduction <add>, %36, %cst_18 [0] : vector<8x8x128xf32> to vector<8x128xf32>
      %38 = arith.addf %32, %37 : vector<8x128xf32>
      %c0_19 = arith.constant 0 : index
      %c0_20 = arith.constant 0 : index
      %c0_21 = arith.constant 0 : index
      %c0_22 = arith.constant 0 : index
      %39 = vector.load %arg4[%c0_19, %c0_20, %c0_21, %c0_22] : memref<1x3x8x128xf32, #tpu.memory_space<vmem>>, vector<1x1x8x128xf32>
      %40 = vector.shape_cast %39 : vector<1x1x8x128xf32> to vector<8x128xf32>
      %41 = vector.shape_cast %38 : vector<8x128xf32> to vector<1x1x8x128xf32>
      tpu.vector_store %arg4[%c0_19, %c0_20, %c0_21, %c0_22], %41 {strides = array<i32>} : memref<1x3x8x128xf32, #tpu.memory_space<vmem>>, vector<1x1x8x128xf32>,
      %c0_23 = arith.constant 0 : index
      %c1 = arith.constant 1 : index
      %c0_24 = arith.constant 0 : index
      %c0_25 = arith.constant 0 : index
      %42 = vector.load %arg4[%c0_23, %c1, %c0_24, %c0_25] : memref<1x3x8x128xf32, #tpu.memory_space<vmem>>, vector<1x1x8x128xf32>
      %43 = vector.shape_cast %42 : vector<1x1x8x128xf32> to vector<8x128xf32>
      %44 = vector.shape_cast %28 : vector<64x128xf32> to vector<1x64x128xf32>
      %cst_26 = arith.constant dense<0.000000e+00> : vector<64x128xf32>
      %45 = vector.multi_reduction <add>, %44, %cst_26 [0] : vector<1x64x128xf32> to vector<64x128xf32>
      %46 = vector.shape_cast %45 : vector<64x128xf32> to vector<8x8x128xf32>
      %cst_27 = arith.constant dense<0.000000e+00> : vector<8x128xf32>
      %47 = vector.multi_reduction <add>, %46, %cst_27 [0] : vector<8x8x128xf32> to vector<8x128xf32>
      %48 = arith.addf %43, %47 : vector<8x128xf32>
      %c0_28 = arith.constant 0 : index
      %c1_29 = arith.constant 1 : index
      %c0_30 = arith.constant 0 : index
      %c0_31 = arith.constant 0 : index
      %49 = vector.load %arg4[%c0_28, %c1_29, %c0_30, %c0_31] : memref<1x3x8x128xf32, #tpu.memory_space<vmem>>, vector<1x1x8x128xf32>
      %50 = vector.shape_cast %49 : vector<1x1x8x128xf32> to vector<8x128xf32>
      %51 = vector.shape_cast %48 : vector<8x128xf32> to vector<1x1x8x128xf32>
      tpu.vector_store %arg4[%c0_28, %c1_29, %c0_30, %c0_31], %51 {strides = array<i32>} : memref<1x3x8x128xf32, #tpu.memory_space<vmem>>, vector<1x1x8x128xf32>,
      %c0_32 = arith.constant 0 : index
      %c2 = arith.constant 2 : index
      %c0_33 = arith.constant 0 : index
      %c0_34 = arith.constant 0 : index
      %52 = vector.load %arg4[%c0_32, %c2, %c0_33, %c0_34] : memref<1x3x8x128xf32, #tpu.memory_space<vmem>>, vector<1x1x8x128xf32>
      %53 = vector.shape_cast %52 : vector<1x1x8x128xf32> to vector<8x128xf32>
      %54 = vector.shape_cast %30 : vector<64x128xf32> to vector<1x64x128xf32>
      %cst_35 = arith.constant dense<0.000000e+00> : vector<64x128xf32>
      %55 = vector.multi_reduction <add>, %54, %cst_35 [0] : vector<1x64x128xf32> to vector<64x128xf32>
      %56 = vector.shape_cast %55 : vector<64x128xf32> to vector<8x8x128xf32>
      %cst_36 = arith.constant dense<0.000000e+00> : vector<8x128xf32>
      %57 = vector.multi_reduction <add>, %56, %cst_36 [0] : vector<8x8x128xf32> to vector<8x128xf32>
      %58 = arith.addf %53, %57 : vector<8x128xf32>
      %c0_37 = arith.constant 0 : index
      %c2_38 = arith.constant 2 : index
      %c0_39 = arith.constant 0 : index
      %c0_40 = arith.constant 0 : index
      %59 = vector.load %arg4[%c0_37, %c2_38, %c0_39, %c0_40] : memref<1x3x8x128xf32, #tpu.memory_space<vmem>>, vector<1x1x8x128xf32>
      %60 = vector.shape_cast %59 : vector<1x1x8x128xf32> to vector<8x128xf32>
      %61 = vector.shape_cast %58 : vector<8x128xf32> to vector<1x1x8x128xf32>
      tpu.vector_store %arg4[%c0_37, %c2_38, %c0_39, %c0_40], %61 {strides = array<i32>} : memref<1x3x8x128xf32, #tpu.memory_space<vmem>>, vector<1x1x8x128xf32>,
    } else {
    }
    return
  }
  func.func @transform_0(%arg0: i32, %arg1: i32) -> (i32, i32) {
    %c1_i32 = arith.constant 1 : i32
    %0 = arith.muli %arg0, %c1_i32 : i32
    %1 = arith.addi %0, %arg1 : i32
    %c0_i32 = arith.constant 0 : i32
    %2 = arith.minsi %1, %c0_i32 : i32
    %c0_i32_0 = arith.constant 0 : i32
    %c0_i32_1 = arith.constant 0 : i32
    return %2, %c0_i32_0 : i32, i32
  }
  func.func @transform_1(%arg0: i32, %arg1: i32) -> (i32, i32) {
    %c1_i32 = arith.constant 1 : i32
    %0 = arith.muli %arg0, %c1_i32 : i32
    %1 = arith.addi %0, %arg1 : i32
    %c0_i32 = arith.constant 0 : i32
    %2 = arith.minsi %1, %c0_i32 : i32
    %c0_i32_0 = arith.constant 0 : i32
    %c0_i32_1 = arith.constant 0 : i32
    return %2, %c0_i32_0 : i32, i32
  }
  func.func @transform_2(%arg0: i32, %arg1: i32) -> (i32, i32, i32, i32) {
    %c0_i32 = arith.constant 0 : i32
    %c0_i32_0 = arith.constant 0 : i32
    %c0_i32_1 = arith.constant 0 : i32
    %c0_i32_2 = arith.constant 0 : i32
    return %arg0, %c0_i32, %c0_i32_0, %c0_i32_1 : i32, i32, i32, i32
  }
}

</mosaic_0001>

<bundles_post_ra>
// kernel: tpu_custom_call.1
= control target key start
LH: loop header
LB: loop body
LE: loop exit
PB: predicated region body
PF: predicated region fallthrough
CT: control target
= control target key end

     0   :  { %7 = vsyncpa [#allocation3], 0  ;;  %s444_s0 = inlined_call_operand.hbm [shape: f32[64,128], index: 0, kind: input, shape index: {}]   ;;  %s445_s1 = inlined_call_operand.hbm [shape: f32[64,128], index: 1, kind: input, shape index: {}]   ;;  %s446_s2 = inlined_call_operand.hbm [shape: f32[1,3,8,128], index: 2, kind: output, shape index: {}]  }
   0x1   :  { %8 = vsyncpa [#allocation6], 0 }
   0x2   :  { %9 = vsyncpa [#allocation4], 0  ;;  %s20_s11 = sshll.u32 %s444_s0, 4  ;;  %s406_s12 = smov [#allocation2]   ;;  %s21_s11 = int_to_ptr.hbm [resolvable:$true] %s20_s11 }
   0x3   :  { %s22_s13 = sshll.u32 %s406_s12, 4  ;;  %s39_s16 = sshll.u32 %s445_s1, 4  ;;  %s23_s13 = int_to_ptr.vmem [resolvable:$true] %s22_s13  ;;  %s40_s16 = int_to_ptr.hbm [resolvable:$true] %s39_s16 }
   0x4   :  { %s407_s17 = smov 128   ;;  %s408_s18 = smov 8  }
   0x5   :  { %28 = dma.hbm_to_vmem [thread:$0]  %s21_s11, 1024, %s23_s13, [#allocation3], %s407_s17, %s407_s17, %s408_s18  }
   0x6   :  { %s409_s19 = smov [#allocation5]  }
   0x7   :  { %s41_s20 = sshll.u32 %s409_s19, 4  ;;  %s42_s20 = int_to_ptr.vmem [resolvable:$true] %s41_s20 }
   0x8   :  { %47 = dma.hbm_to_vmem [thread:$0]  %s40_s16, 1024, %s42_s20, [#allocation6], %s407_s17, %s407_s17, %s408_s18  }
   0x9   :  { %400 = dma.done.wait [#allocation3], 1024  }
   0xa   :  { %401 = vsyncadd [#allocation3], 4294966272 }
   0xb   :  { %402 = dma.done.wait [#allocation6], 1024  }
   0xc   :  { %403 = vsyncadd [#allocation6], 4294966272  ;;  %v72_v0 = vld [vmem:[#allocation2] sm:$0xff]  ;;  %v73_v1 = vld [vmem:[#allocation2 + $0x8] sm:$0xff]  ;;  %s410_s0 = smov [#allocation7]   ;;  %s300_s23 = sshll.u32 %s446_s2, 4  ;;  %s301_s23 = int_to_ptr.hbm [resolvable:$true] %s300_s23 }
   0xd   :  { %v80_v2 = vld [vmem:[#allocation5] sm:$0xff]  ;;  %v81_v3 = vld [vmem:[#allocation5 + $0x8] sm:$0xff]  ;;  %v88_v4 = vmul.f32 0.5, %v72_v0  ;;  %v89_v5 = vmul.f32 0.5, %v73_v1  ;;  %s298_s1 = sshll.u32 %s410_s0, 4  ;;  %s299_s1 = int_to_ptr.vmem [resolvable:$true] %s298_s1 }
   0xe   :  { %v285_v6 = vadd.f32 %v81_v3, %v80_v2 }
   0xf   :  { %324 = vtanh.f32 %v88_v4 }
  0x10   :  { %326 = vtanh.f32 %v89_v5  ;;  %293 = vst [vmem:[#allocation7 + $0x10] sm:$0xff] %v285_v6 }
  0x15   :  { %v325_v7 = vpop.eup %324 }
  0x16   :  { %v327_v8 = vpop.eup %326  ;;  %v104_v9 = vmul.f32 0.5, %v325_v7 }
  0x17   :  { %v105_v10 = vmul.f32 0.5, %v327_v8 }
  0x18   :  { %v112_v11 = vadd.f32 0.5, %v104_v9 }
  0x19   :  { %v113_v12 = vadd.f32 0.5, %v105_v10 }
  0x1a   :  { %v231_v13 = vmul.f32 %v112_v11, %v80_v2 }
  0x1b   :  { %v232_v14 = vmul.f32 %v113_v12, %v81_v3  ;;  %v266_v15 = vadd.f32 %v113_v12, %v112_v11 }
  0x1d   :  { %v247_v16 = vadd.f32 %v232_v14, %v231_v13  ;;  %274 = vst [vmem:[#allocation7 + $0x8] sm:$0xff] %v266_v15 }
  0x1f   :  { %255 = vst [vmem:[#allocation7] sm:$0xff] %v247_v16 }
  0x20   :  { %306 = dma.vmem_to_hbm [thread:$0]  %s299_s1, 384, %s301_s23, [#allocation4], %s407_s17, %s407_s17, %s408_s18  }
  0x21   :  { %404 = dma.done.wait [#allocation4], 384  }
  0x22   :  { %405 = vsyncadd [#allocation4], 4294966912 }
  0x23   :  { %311 = vsyncpa [#allocation3], 1 }
  0x24   :  { %312 = vsyncpa [#allocation6], 1 }
  0x25   :  { %313 = vsyncpa [#allocation4], 1 }

</bundles_post_ra>
